<compile_context>
chip_gen: v7x
topology: tpu7x:2x2x1
jax: 0.10.0
libtpu: 0.0.40
codegen_flags: <defaults>
</compile_context>

<pallas_src>
import numpy as np
import jax
import jax.numpy as jnp
from jax.experimental import pallas as pl
from jax.experimental.pallas import tpu as pltpu


# --------------------------------------------------------------------------- #
# Bilinear (align_corners=False) separable 1-D interpolation matrices.
# --------------------------------------------------------------------------- #
def _interp_matrix(out_size, in_size):
    """Matrix M of shape (out_size, in_size) such that out = M @ in."""
    m = np.zeros((out_size, in_size), np.float32)
    if in_size == 1:
        m[:, 0] = 1.0
        return m
    scale = in_size / out_size
    for i in range(out_size):
        src = (i + 0.5) * scale - 0.5
        src = min(max(src, 0.0), in_size - 1.0)
        lo = int(np.floor(src))
        hi = min(lo + 1, in_size - 1)
        frac = src - lo
        m[i, lo] += 1.0 - frac
        m[i, hi] += frac
    return m


# --------------------------------------------------------------------------- #
# Per-generation VMEM sizing.
# --------------------------------------------------------------------------- #
def _vmem_capacity_bytes():
    try:
        cap = getattr(pltpu.get_tpu_info(), "vmem_capacity_bytes", None)
    except Exception:
        cap = None
    if not cap:
        cap = 64 * 1024 * 1024  # conservative fallback: v7x per-core VMEM
    return int(cap)


def _choose_tile_rows(H, Q, w, W, budget_bytes):
    # Streamed inputs per output row (double-buffered by the Pallas pipeline):
    #   half-upsampled masks: 2 * (Q * w * 2) bytes ; ood rows: 2 * (W * 4) bytes
    per_row = 4 * Q * w + 8 * W
    # Row-count independent VMEM: accumulator scratch + per-row intermediates.
    fixed = 8 * W * 4 + 16 * Q * W + 256 * 1024
    avail = max(budget_bytes - fixed, 8 * per_row)
    t = (avail // per_row) // 8 * 8
    t = max(8, min(t, ((H + 7) // 8) * 8))
    return int(t)


# --------------------------------------------------------------------------- #
# Kernel.
# --------------------------------------------------------------------------- #
def _rba_kernel(cls_ref, half_ref, cmat_ref, ood_ref, out_ref, probs_s, acc_ref):
    # cls_ref : (Q, C+1)   f32     half_ref: (T_H, Q, w) bf16   (row-interp'd masks)
    # cmat_ref: (w, W)     bf16    ood_ref : (T_H, W)    f32
    # out_ref : (4, 128)   f32     probs_s : (Q, C+1)    bf16   VMEM scratch
    # acc_ref : (4, W)     f32     rows = [id_sq_sum, id_cnt, ood_sq_sum, ood_cnt]
    t = pl.program_id(1)
    n_rows = half_ref.shape[0]
    num_cls = cls_ref.shape[1]

    @pl.when(t == 0)
    def _init():
        # Class softmax hoisted out of the spatial loop (once per batch element).
        cls = cls_ref[...].astype(jnp.float32)
        m = jnp.max(cls, axis=-1, keepdims=True)
        e = jnp.exp(cls - m)
        p = e / jnp.sum(e, axis=-1, keepdims=True)
        col = jax.lax.broadcasted_iota(jnp.int32, p.shape, 1)
        p = jnp.where(col == num_cls - 1, 0.0, p)     # drop "no-object" class
        probs_s[...] = p.astype(probs_s.dtype)
        acc_ref[...] = jnp.zeros_like(acc_ref)

    probs = probs_s[...]          # (Q, C+1) bf16 — hoisted out of the row loop
    cmat = cmat_ref[...]          # (w, W)   bf16

    def _row(r, carry):
        # Fused bilinear COLUMN interpolation for one output row (bf16 MXU).
        up = jnp.dot(half_ref[r], cmat, preferred_element_type=jnp.float32)  # (Q, W)
        # TODO(synk): on v6e/v7x a bf16 sigmoid/tanh (bf16 EUP path) roughly
        # doubles transcendental throughput; kept f32 for v5e compatibility.
        sig = jax.nn.sigmoid(up).astype(jnp.bfloat16)
        # seg[c, x] = sum_q probs[q, c] * sig[q, x]   (class mixing, bf16 MXU)
        seg = jax.lax.dot_general(probs, sig, (((0,), (0,)), ((), ())),
                                  preferred_element_type=jnp.float32)        # (C+1, W)
        score = -jnp.sum(jnp.tanh(seg), axis=0, keepdims=True)               # (1, W)

        ood = ood_ref[pl.ds(r, 1), :]                                        # (1, W)
        # Overlapping GT instances can give ood >= 2, so the outlier set is
        # ood > 0 (bool semantics); inlier set is ood == 0.  Padded rows carry
        # -1 and fall into neither set.
        id_m = ood == 0.0
        ood_m = ood > 0.0
        id_sq = jnp.where(id_m, jnp.maximum(score, 0.0) ** 2, 0.0)
        ood_sq = jnp.where(ood_m, jnp.maximum(5.0 - score, 0.0) ** 2, 0.0)

        # Pure-VPU per-lane accumulation; the cross-lane collapse happens only
        # once per batch element (in _finalize).
        acc_ref[0:1, :] = acc_ref[0:1, :] + id_sq
        acc_ref[1:2, :] = acc_ref[1:2, :] + id_m.astype(jnp.float32)
        acc_ref[2:3, :] = acc_ref[2:3, :] + ood_sq
        acc_ref[3:4, :] = acc_ref[3:4, :] + ood_m.astype(jnp.float32)
        return carry

    jax.lax.fori_loop(0, n_rows, _row, 0)

    @pl.when(t == pl.num_programs(1) - 1)
    def _finalize():
        sums = jnp.sum(acc_ref[...], axis=1, keepdims=True)   # (4, 1), one XLU collapse
        out_ref[...] = jnp.broadcast_to(sums, (4, 128))


# --------------------------------------------------------------------------- #
# Wrapper.
# --------------------------------------------------------------------------- #
def rba_loss(cls_scores, mask_preds, ood_mask, *, loss_weight=1.0, tile_rows=None):
    B, Q, C1 = cls_scores.shape
    _, _, h, w = mask_preds.shape
    H, W = ood_mask.shape[-2:]

    cap = _vmem_capacity_bytes()
    vmem_limit = int(min(cap * 0.75, 100 * 1024 * 1024))
    if tile_rows is None:
        T_H = _choose_tile_rows(H, Q, w, W, int(cap * 0.4))
    else:
        T_H = max(8, (int(tile_rows) // 8) * 8)
    n_t = -(-H // T_H)            # cdiv
    H_pad = n_t * T_H

    # Separable bilinear interpolation (align_corners=False), built once on host.
    R = _interp_matrix(H, h)                     # (H, h)  row interpolation
    R_pad = np.zeros((H_pad, h), np.float32)
    R_pad[:H] = R
    Cm = _interp_matrix(W, w).T                  # (w, W)  column interpolation

    # Row interpolation on the small low-res tensor in XLA (f32), streamed to the
    # kernel as bf16 with layout (B, H_pad, Q, w) so the kernel only needs
    # leading-axis dynamic indexing (no in-kernel reshapes).
    half = jnp.einsum('yh,bqhw->byqw', jnp.asarray(R_pad),
                      mask_preds.astype(jnp.float32)).astype(jnp.bfloat16)

    ood = ood_mask.astype(jnp.float32)
    if H_pad > H:
        # Padded rows get -1: neither inlier (==0) nor outlier (>0) -> excluded.
        ood = jnp.pad(ood, ((0, 0), (0, H_pad - H), (0, 0)), constant_values=-1.0)

    cmat = jnp.asarray(Cm).astype(jnp.bfloat16)  # (w, W)

    partials = pl.pallas_call(
        _rba_kernel,
        out_shape=jax.ShapeDtypeStruct((B, 4, 128), jnp.float32),
        grid_spec=pltpu.PrefetchScalarGridSpec(
            num_scalar_prefetch=0,
            grid=(B, n_t),
            in_specs=[
                pl.BlockSpec((None, Q, C1), lambda b, t: (b, 0, 0)),
                pl.BlockSpec((None, T_H, Q, w), lambda b, t: (b, t, 0, 0)),
                pl.BlockSpec((w, W), lambda b, t: (0, 0)),
                pl.BlockSpec((None, T_H, W), lambda b, t: (b, t, 0)),
            ],
            out_specs=pl.BlockSpec((None, 4, 128), lambda b, t: (b, 0, 0)),
            scratch_shapes=[
                pltpu.VMEM((Q, C1), jnp.bfloat16),   # class probabilities
                pltpu.VMEM((4, W), jnp.float32),     # per-lane partial sums
            ],
        ),
        compiler_params=pltpu.CompilerParams(
            dimension_semantics=("parallel", "arbitrary"),
            vmem_limit_bytes=vmem_limit,
        ),
    )(cls_scores.astype(jnp.float32), half, cmat, ood)

    # Each output row is one scalar broadcast over 128 lanes; reduce over batch.
    totals = jnp.sum(partials[:, :, 0], axis=0)              # (4,)
    id_sum, id_cnt, ood_sum, ood_cnt = totals[0], totals[1], totals[2], totals[3]
    loss = id_sum / jnp.maximum(id_cnt, 1.0)                 # mean over inlier pixels
    loss = loss + jnp.where(ood_cnt > 0.0,
                            ood_sum / jnp.maximum(ood_cnt, 1.0), 0.0)
    return loss_weight * loss


# --------------------------------------------------------------------------- #
# Host-side glue replicating get_ood_mask + torch.stack over batch_gt_instances.
# --------------------------------------------------------------------------- #
def build_ood_mask(labels_list, masks_list, H, W):
    outs = []
    for labels, masks in zip(labels_list, masks_list):
        sel = labels >= 19
        if sel.any():
            outs.append(masks[sel].sum(axis=0))
        else:
            outs.append(np.zeros((H, W), np.float32))
    return jnp.asarray(np.stack(outs).astype(np.float32))


# --------------------------------------------------------------------------- #
# Pure-JAX reference (same interpolation matrices) for a loose self-check.
# --------------------------------------------------------------------------- #
def _rba_reference(cls_scores, mask_preds, ood_mask, loss_weight=1.0):
    B, Q, C1 = cls_scores.shape
    _, _, h, w = mask_preds.shape
    H, W = ood_mask.shape[-2:]
    R = jnp.asarray(_interp_matrix(H, h))
    Cm = jnp.asarray(_interp_matrix(W, w).T)
    probs = jax.nn.softmax(cls_scores.astype(jnp.float32), axis=-1)[..., :-1]
    up = jnp.einsum('yh,bqhw,wx->bqyx', R, mask_preds.astype(jnp.float32), Cm)
    sig = jax.nn.sigmoid(up)
    seg = jnp.einsum('bqc,bqyx->bcyx', probs, sig)
    score = -jnp.tanh(seg).sum(axis=1)                       # (B, H, W)
    ood = ood_mask.astype(jnp.float32)
    id_m = ood == 0.0
    ood_m = ood > 0.0
    id_sq = jnp.where(id_m, jnp.maximum(score, 0.0) ** 2, 0.0)
    ood_sq = jnp.where(ood_m, jnp.maximum(5.0 - score, 0.0) ** 2, 0.0)
    loss = jnp.sum(id_sq) / jnp.maximum(jnp.sum(id_m.astype(jnp.float32)), 1.0)
    ood_cnt = jnp.sum(ood_m.astype(jnp.float32))
    loss = loss + jnp.where(ood_cnt > 0.0,
                            jnp.sum(ood_sq) / jnp.maximum(ood_cnt, 1.0), 0.0)
    return loss_weight * loss


if __name__ == "__main__":
    key = jax.random.PRNGKey(0)
    B, Q, C1 = 2, 8, 20          # 19 "thing/stuff" classes + 1 no-object class
    h, w = 16, 16                # mask_preds resolution
    H, W = 32, 32                # GT / ood-mask resolution

    k1, k2, k3, k4 = jax.random.split(key, 4)
    cls_scores = jax.random.normal(k1, (B, Q, C1), jnp.float32)
    mask_preds = jax.random.normal(k2, (B, Q, h, w), jnp.float32)

    # Synthetic batch_gt_instances:
    #   image 0: labels [3, 7, 19] -> one OOD instance (label >= 19)
    #   image 1: labels [1, 5]     -> no OOD instance (ood mask all zeros)
    labels0 = np.array([3, 7, 19], np.int32)
    masks0 = np.asarray(jax.random.uniform(k3, (3, H, W)) > 0.7, np.float32)
    labels1 = np.array([1, 5], np.int32)
    masks1 = np.asarray(jax.random.uniform(k4, (2, H, W)) > 0.7, np.float32)
    ood_mask = build_ood_mask([labels0, labels1], [masks0, masks1], H, W)

    # tile_rows=8 forces several spatial tiles to exercise the accumulation path.
    loss = rba_loss(cls_scores, mask_preds, ood_mask, loss_weight=1.0, tile_rows=8)
    loss = jax.block_until_ready(loss)

    ref = jax.block_until_ready(_rba_reference(cls_scores, mask_preds, ood_mask))
    np.testing.assert_allclose(float(loss), float(ref), rtol=5e-2, atol=1e-3)
    print("KERNEL_OK")
</pallas_src>

<mosaic_0001>
module attributes {stable_mosaic.version = 11 : i64} {
  func.func @_rba_kernel(%arg0: i32, %arg1: i32, %arg2: memref<1x8x20xf32, #tpu.memory_space<vmem>>, %arg3: memref<1x8x8x16xbf16, #tpu.memory_space<vmem>>, %arg4: memref<16x32xbf16, #tpu.memory_space<vmem>>, %arg5: memref<1x8x32xf32, #tpu.memory_space<vmem>>, %arg6: memref<1x4x128xf32, #tpu.memory_space<vmem>>, %arg7: memref<8x20xbf16, #tpu.memory_space<vmem>>, %arg8: memref<4x32xf32, #tpu.memory_space<vmem>>) attributes {dimension_semantics = [#tpu.dimension_semantics<parallel>, #tpu.dimension_semantics<arbitrary>], iteration_bounds = array<i64: 2, 4>, scalar_prefetch = 0 : i64, scratch_operands = 2 : i64, tpu.core_type = #tpu.core_type<tc>, window_params = [{transform_indices = @transform_0, window_bounds = array<i64: 1, 8, 20>}, {transform_indices = @transform_1, window_bounds = array<i64: 1, 8, 8, 16>}, {pipeline_mode = #tpu.pipeline_mode<synchronous>, transform_indices = @transform_2, window_bounds = array<i64: 16, 32>}, {transform_indices = @transform_3, window_bounds = array<i64: 1, 8, 32>}, {transform_indices = @transform_4, window_bounds = array<i64: 1, 4, 128>}]} {
    %c0_i32 = arith.constant 0 : i32
    %0 = arith.cmpi eq, %arg1, %c0_i32 : i32
    %1 = arith.extui %0 : i1 to i32
    %c0_i32_0 = arith.constant 0 : i32
    %2 = arith.cmpi ne, %1, %c0_i32_0 : i32
    scf.if %2 {
      %c0_7 = arith.constant 0 : index
      %c0_8 = arith.constant 0 : index
      %c0_9 = arith.constant 0 : index
      %9 = vector.load %arg2[%c0_7, %c0_8, %c0_9] : memref<1x8x20xf32, #tpu.memory_space<vmem>>, vector<1x8x20xf32>
      %10 = vector.shape_cast %9 : vector<1x8x20xf32> to vector<8x20xf32>
      %cst = arith.constant dense<0xFF800000> : vector<8xf32>
      %11 = vector.multi_reduction <maximumf>, %10, %cst [1] : vector<8x20xf32> to vector<8xf32>
      %12 = vector.shape_cast %11 : vector<8xf32> to vector<8x1xf32>
      %13 = vector.broadcast %12 : vector<8x1xf32> to vector<8x20xf32>
      %14 = arith.subf %10, %13 : vector<8x20xf32>
      %15 = math.exp %14 : vector<8x20xf32>
      %cst_10 = arith.constant dense<0.000000e+00> : vector<8xf32>
      %16 = vector.multi_reduction <add>, %15, %cst_10 [1] : vector<8x20xf32> to vector<8xf32>
      %17 = vector.shape_cast %16 : vector<8xf32> to vector<8x1xf32>
      %18 = vector.broadcast %17 : vector<8x1xf32> to vector<8x20xf32>
      %19 = arith.divf %15, %18 : vector<8x20xf32>
      %20 = tpu.iota {dimensions = array<i32: 1>} : vector<8x20xi32>
      %c19_i32 = arith.constant 19 : i32
      %21 = vector.broadcast %c19_i32 : i32 to vector<8x20xi32>
      %22 = arith.cmpi eq, %20, %21 : vector<8x20xi32>
      %cst_11 = arith.constant 0.000000e+00 : f32
      %23 = vector.broadcast %cst_11 : f32 to vector<8x20xf32>
      %24 = arith.select %22, %23, %19 : vector<8x20xi1>, vector<8x20xf32>
      %25 = arith.truncf %24 : vector<8x20xf32> to vector<8x20xbf16>
      %c0_12 = arith.constant 0 : index
      %c0_13 = arith.constant 0 : index
      %26 = vector.load %arg7[%c0_12, %c0_13] : memref<8x20xbf16, #tpu.memory_space<vmem>>, vector<8x20xbf16>
      tpu.vector_store %arg7[%c0_12, %c0_13], %25 {strides = array<i32>} : memref<8x20xbf16, #tpu.memory_space<vmem>>, vector<8x20xbf16>,
      %cst_14 = arith.constant 0.000000e+00 : f32
      %27 = vector.broadcast %cst_14 : f32 to vector<4x32xf32>
      %c0_15 = arith.constant 0 : index
      %c0_16 = arith.constant 0 : index
      %28 = vector.load %arg8[%c0_15, %c0_16] : memref<4x32xf32, #tpu.memory_space<vmem>>, vector<4x32xf32>
      tpu.vector_store %arg8[%c0_15, %c0_16], %27 {strides = array<i32>} : memref<4x32xf32, #tpu.memory_space<vmem>>, vector<4x32xf32>,
    } else {
    }
    %c0 = arith.constant 0 : index
    %c0_1 = arith.constant 0 : index
    %3 = vector.load %arg7[%c0, %c0_1] : memref<8x20xbf16, #tpu.memory_space<vmem>>, vector<8x20xbf16>
    %c0_2 = arith.constant 0 : index
    %c0_3 = arith.constant 0 : index
    %4 = vector.load %arg4[%c0_2, %c0_3] : memref<16x32xbf16, #tpu.memory_space<vmem>>, vector<16x32xbf16>
    %c0_i32_4 = arith.constant 0 : i32
    %c8_i32 = arith.constant 8 : i32
    %5 = arith.addi %c0_i32_4, %c8_i32 : i32
    %c1_i32 = arith.constant 1 : i32
    scf.for %arg9 = %c0_i32_4 to %5 step %c1_i32  : i32 {
      %c0_7 = arith.constant 0 : index
      %9 = arith.index_cast %arg9 : i32 to index
      %c0_8 = arith.constant 0 : index
      %c0_9 = arith.constant 0 : index
      %10 = vector.load %arg3[%c0_7, %9, %c0_8, %c0_9] : memref<1x8x8x16xbf16, #tpu.memory_space<vmem>>, vector<1x1x8x16xbf16>
      %11 = vector.shape_cast %10 : vector<1x1x8x16xbf16> to vector<8x16xbf16>
      %cst = arith.constant dense<0.000000e+00> : vector<8x32xf32>
      %12 = tpu.matmul %11, %4, %cst {dimension_numbers = #tpu.dot_dimension_numbers<[1], [0], [0], [1], [0, 0, 1, 1], [], []>} : vector<8x16xbf16>, vector<16x32xbf16>, vector<8x32xf32> -> vector<8x32xf32>
      %13 = arith.negf %12 : vector<8x32xf32>
      %14 = math.exp %13 : vector<8x32xf32>
      %cst_10 = arith.constant 1.000000e+00 : f32
      %15 = vector.broadcast %cst_10 : f32 to vector<8x32xf32>
      %16 = arith.addf %15, %14 : vector<8x32xf32>
      %17 = arith.divf %15, %16 : vector<8x32xf32>
      %18 = arith.truncf %17 : vector<8x32xf32> to vector<8x32xbf16>
      %cst_11 = arith.constant dense<0.000000e+00> : vector<20x32xf32>
      %19 = tpu.matmul %3, %18, %cst_11 {dimension_numbers = #tpu.dot_dimension_numbers<[0], [0], [1], [1], [0, 1, 1, 1], [], []>} : vector<8x20xbf16>, vector<8x32xbf16>, vector<20x32xf32> -> vector<20x32xf32>
      %20 = math.tanh %19 : vector<20x32xf32>
      %cst_12 = arith.constant dense<0.000000e+00> : vector<32xf32>
      %21 = vector.multi_reduction <add>, %20, %cst_12 [0] : vector<20x32xf32> to vector<32xf32>
      %22 = vector.shape_cast %21 : vector<32xf32> to vector<1x32xf32>
      %cst_13 = arith.constant 0.000000e+00 : f32
      %23 = vector.broadcast %cst_13 : f32 to vector<1x32xf32>
      %24 = arith.subf %23, %22 : vector<1x32xf32>
      %c0_14 = arith.constant 0 : index
      %25 = arith.index_cast %arg9 : i32 to index
      %c0_15 = arith.constant 0 : index
      %26 = vector.load %arg5[%c0_14, %25, %c0_15] : memref<1x8x32xf32, #tpu.memory_space<vmem>>, vector<1x1x32xf32>
      %27 = vector.shape_cast %26 : vector<1x1x32xf32> to vector<1x32xf32>
      %cst_16 = arith.constant 0.000000e+00 : f32
      %28 = vector.broadcast %cst_16 : f32 to vector<1x32xf32>
      %29 = arith.cmpf oeq, %27, %28 : vector<1x32xf32>
      %cst_17 = arith.constant 0.000000e+00 : f32
      %30 = vector.broadcast %cst_17 : f32 to vector<1x32xf32>
      %31 = arith.cmpf ogt, %27, %30 : vector<1x32xf32>
      %cst_18 = arith.constant 0.000000e+00 : f32
      %32 = vector.broadcast %cst_18 : f32 to vector<1x32xf32>
      %33 = arith.maximumf %24, %32 : vector<1x32xf32>
      %34 = arith.mulf %33, %33 : vector<1x32xf32>
      %cst_19 = arith.constant 0.000000e+00 : f32
      %35 = vector.broadcast %cst_19 : f32 to vector<1x32xf32>
      %36 = arith.select %29, %34, %35 : vector<1x32xi1>, vector<1x32xf32>
      %cst_20 = arith.constant 5.000000e+00 : f32
      %37 = vector.broadcast %cst_20 : f32 to vector<1x32xf32>
      %38 = arith.subf %37, %24 : vector<1x32xf32>
      %cst_21 = arith.constant 0.000000e+00 : f32
      %39 = vector.broadcast %cst_21 : f32 to vector<1x32xf32>
      %40 = arith.maximumf %38, %39 : vector<1x32xf32>
      %41 = arith.mulf %40, %40 : vector<1x32xf32>
      %cst_22 = arith.constant 0.000000e+00 : f32
      %42 = vector.broadcast %cst_22 : f32 to vector<1x32xf32>
      %43 = arith.select %31, %41, %42 : vector<1x32xi1>, vector<1x32xf32>
      %c0_23 = arith.constant 0 : index
      %c0_24 = arith.constant 0 : index
      %44 = vector.load %arg8[%c0_23, %c0_24] : memref<4x32xf32, #tpu.memory_space<vmem>>, vector<1x32xf32>
      %45 = arith.addf %44, %36 : vector<1x32xf32>
      %c0_25 = arith.constant 0 : index
      %c0_26 = arith.constant 0 : index
      %46 = vector.load %arg8[%c0_25, %c0_26] : memref<4x32xf32, #tpu.memory_space<vmem>>, vector<1x32xf32>
      tpu.vector_store %arg8[%c0_25, %c0_26], %45 {strides = array<i32>} : memref<4x32xf32, #tpu.memory_space<vmem>>, vector<1x32xf32>,
      %c1 = arith.constant 1 : index
      %c0_27 = arith.constant 0 : index
      %47 = vector.load %arg8[%c1, %c0_27] : memref<4x32xf32, #tpu.memory_space<vmem>>, vector<1x32xf32>
      %48 = arith.extui %29 : vector<1x32xi1> to vector<1x32xi32>
      %49 = arith.sitofp %48 : vector<1x32xi32> to vector<1x32xf32>
      %50 = arith.addf %47, %49 : vector<1x32xf32>
      %c1_28 = arith.constant 1 : index
      %c0_29 = arith.constant 0 : index
      %51 = vector.load %arg8[%c1_28, %c0_29] : memref<4x32xf32, #tpu.memory_space<vmem>>, vector<1x32xf32>
      tpu.vector_store %arg8[%c1_28, %c0_29], %50 {strides = array<i32>} : memref<4x32xf32, #tpu.memory_space<vmem>>, vector<1x32xf32>,
      %c2 = arith.constant 2 : index
      %c0_30 = arith.constant 0 : index
      %52 = vector.load %arg8[%c2, %c0_30] : memref<4x32xf32, #tpu.memory_space<vmem>>, vector<1x32xf32>
      %53 = arith.addf %52, %43 : vector<1x32xf32>
      %c2_31 = arith.constant 2 : index
      %c0_32 = arith.constant 0 : index
      %54 = vector.load %arg8[%c2_31, %c0_32] : memref<4x32xf32, #tpu.memory_space<vmem>>, vector<1x32xf32>
      tpu.vector_store %arg8[%c2_31, %c0_32], %53 {strides = array<i32>} : memref<4x32xf32, #tpu.memory_space<vmem>>, vector<1x32xf32>,
      %c3 = arith.constant 3 : index
      %c0_33 = arith.constant 0 : index
      %55 = vector.load %arg8[%c3, %c0_33] : memref<4x32xf32, #tpu.memory_space<vmem>>, vector<1x32xf32>
      %56 = arith.extui %31 : vector<1x32xi1> to vector<1x32xi32>
      %57 = arith.sitofp %56 : vector<1x32xi32> to vector<1x32xf32>
      %58 = arith.addf %55, %57 : vector<1x32xf32>
      %c3_34 = arith.constant 3 : index
      %c0_35 = arith.constant 0 : index
      %59 = vector.load %arg8[%c3_34, %c0_35] : memref<4x32xf32, #tpu.memory_space<vmem>>, vector<1x32xf32>
      tpu.vector_store %arg8[%c3_34, %c0_35], %58 {strides = array<i32>} : memref<4x32xf32, #tpu.memory_space<vmem>>, vector<1x32xf32>,
    }
    %c8_i32_5 = arith.constant 8 : i32
    %c3_i32 = arith.constant 3 : i32
    %6 = arith.cmpi eq, %arg1, %c3_i32 : i32
    %7 = arith.extui %6 : i1 to i32
    %c0_i32_6 = arith.constant 0 : i32
    %8 = arith.cmpi ne, %7, %c0_i32_6 : i32
    scf.if %8 {
      %c0_7 = arith.constant 0 : index
      %c0_8 = arith.constant 0 : index
      %9 = vector.load %arg8[%c0_7, %c0_8] : memref<4x32xf32, #tpu.memory_space<vmem>>, vector<4x32xf32>
      %cst = arith.constant dense<0.000000e+00> : vector<4xf32>
      %10 = vector.multi_reduction <add>, %9, %cst [1] : vector<4x32xf32> to vector<4xf32>
      %11 = vector.shape_cast %10 : vector<4xf32> to vector<4x1xf32>
      %12 = vector.shape_cast %11 : vector<4x1xf32> to vector<4x1xf32>
      %13 = vector.broadcast %12 : vector<4x1xf32> to vector<4x128xf32>
      %c0_9 = arith.constant 0 : index
      %c0_10 = arith.constant 0 : index
      %c0_11 = arith.constant 0 : index
      %14 = vector.load %arg6[%c0_9, %c0_10, %c0_11] : memref<1x4x128xf32, #tpu.memory_space<vmem>>, vector<1x4x128xf32>
      %15 = vector.shape_cast %14 : vector<1x4x128xf32> to vector<4x128xf32>
      %16 = vector.shape_cast %13 : vector<4x128xf32> to vector<1x4x128xf32>
      tpu.vector_store %arg6[%c0_9, %c0_10, %c0_11], %16 {strides = array<i32>} : memref<1x4x128xf32, #tpu.memory_space<vmem>>, vector<1x4x128xf32>,
    } else {
    }
    return
  }
  func.func @transform_0(%arg0: i32, %arg1: i32) -> (i32, i32, i32) {
    %c0_i32 = arith.constant 0 : i32
    %c0_i32_0 = arith.constant 0 : i32
    %c0_i32_1 = arith.constant 0 : i32
    return %arg0, %c0_i32, %c0_i32_0 : i32, i32, i32
  }
  func.func @transform_1(%arg0: i32, %arg1: i32) -> (i32, i32, i32, i32) {
    %c0_i32 = arith.constant 0 : i32
    %c0_i32_0 = arith.constant 0 : i32
    %c0_i32_1 = arith.constant 0 : i32
    return %arg0, %arg1, %c0_i32, %c0_i32_0 : i32, i32, i32, i32
  }
  func.func @transform_2(%arg0: i32, %arg1: i32) -> (i32, i32) {
    %c0_i32 = arith.constant 0 : i32
    %c0_i32_0 = arith.constant 0 : i32
    %c0_i32_1 = arith.constant 0 : i32
    return %c0_i32, %c0_i32_0 : i32, i32
  }
  func.func @transform_3(%arg0: i32, %arg1: i32) -> (i32, i32, i32) {
    %c0_i32 = arith.constant 0 : i32
    %c0_i32_0 = arith.constant 0 : i32
    return %arg0, %arg1, %c0_i32 : i32, i32, i32
  }
  func.func @transform_4(%arg0: i32, %arg1: i32) -> (i32, i32, i32) {
    %c0_i32 = arith.constant 0 : i32
    %c0_i32_0 = arith.constant 0 : i32
    %c0_i32_1 = arith.constant 0 : i32
    return %arg0, %c0_i32, %c0_i32_0 : i32, i32, i32
  }
}

</mosaic_0001>

<bundles_post_ra>
// kernel: tpu_custom_call.1
= control target key start
LH: loop header
LB: loop body
LE: loop exit
PB: predicated region body
PF: predicated region fallthrough
CT: control target
= control target key end

     0   :  { %9 = vsyncpa [#allocation5], 0  ;;  %s1099_s0 = inlined_call_operand.vmem [shape: f32[2,8,20], index: 0, kind: input, shape index: {}]   ;;  %s1100_s1 = inlined_call_operand.vmem [shape: bf16[2,32,8,16], index: 1, kind: input, shape index: {}]   ;;  %s1101_s2 = inlined_call_operand.vmem [shape: bf16[16,32], index: 2, kind: input, shape index: {}]   ;;  %s1102_s3 = inlined_call_operand.vmem [shape: f32[2,32,32], index: 3, kind: input, shape index: {}]   ;;  %s1103_s4 = inlined_call_operand.hbm [shape: f32[2,4,128], index: 4, kind: output, shape index: {}]  }
   0x1   :  { %11 = vsyncpa [#allocation5 + $0x1], 0  ;;  %s900_s15 = smov 0   ;;  %s902_s16 = smov 0  }
   0x2   :  { %s904_s17 = smov 0   ;;  %s906_s18 = smov 0  }
   0x3   :  { %s908_s19 = smov 0   ;;  %s910_s20 = smov 0  }
   0x4   :  { %s912_s21 = smov 0   ;;  %s914_s22 = smov 0  }
   0x5 LB: > { %1111 = sst [smem:[#allocation7_spill]] %s837_s15  ;;  %s626_s23 = sadd.s32 4294967295, %s865_s22   ;;  %s865_s22 = sphi %s914_s22, %s17_s22   ;;  %s861_s21 = sphi %s912_s21, %s1129_s21   ;;  %s857_s20 = sphi %s910_s20, %s1128_s20   ;;  %s853_s19 = sphi %s908_s19, %s1127_s19   ;;  %s849_s18 = sphi %s906_s18, %s1126_s18   ;;  %s845_s17 = sphi %s904_s17, %s1125_s17   ;;  %s841_s16 = sphi %s902_s16, %s1131_s16   ;;  %s837_s15 = sphi %s900_s15, %s1130_s15  }
   0x6   : > { %1112 = sst [smem:[#allocation8_spill]] %s845_s17  ;;  %s627_s24 = sadd.s32 4294967294, %s865_s22  }
   0x7   : > { %1113 = sst [smem:[#allocation9_spill]] %s857_s20  ;;  %s26_s25 = sadd.s32 1, %s857_s20 }
   0x8   : > { %1114 = sst [smem:[#allocation10_spill]] %s861_s21  ;;  %p27_p0 = scmp.ge.s32.totalorder %s26_s25, 4 }
   0x9   : > { %s29_s26 = sadd.s32 1, %s861_s21  ;;  %p149_p1 = scmp.ne.s32.totalorder %s845_s17, %s841_s16 }
   0xa   : > { %p150_p2 = scmp.eq.s32.totalorder %s626_s23, 7  ;;  %s1133_s25 = smov (%p27_p0, %s26_s25), 0 }
   0xb   : > { %1115 = sst [smem:[#allocation11_spill]] %s1133_s25  ;;  %s1135_s26 = smov (!%p27_p0, %s29_s26), %s861_s21 }
   0xc   : > { %p949_p3 = por %p150_p2, %p149_p1  ;;  %p155_p4 = scmp.ne.s32.totalorder %s841_s16, %s837_s15 }
   0xd   : > { %p31_p5 = scmp.ge.s32.totalorder %s1135_s26, 2  ;;  %p156_p6 = scmp.eq.s32.totalorder %s627_s24, 7 }
   0xe   : > { %p630_p7 = scmp.ge.s32.totalorder %s865_s22, 1  ;;  %p208_p8 = scmp.lt.s32.totalorder %s865_s22, 9 }
   0xf   : > { %s1137_s26 = smov (%p31_p5, %s1135_s26), 0  ;;  %p959_p9 = por %p156_p6, %p155_p4 }
  0x10   : > { %1117 = sst [smem:[#allocation12_spill]] %s1137_s26  ;;  %p209_p10 = pnand %p630_p7, %p208_p8 }
  0x11   : > { %s1118_s28 = scalar_select %p959_p9, 1, 0 }
  0x12   : > { %s136_s29 = ssub.s32 %s861_s21, %s1137_s26  ;;  %s139_s30 = sadd.s32 1, %s845_s17 }
  0x13   : > { %1119 = sst [smem:[#allocation13_spill]] %s1118_s28  ;;  %p137_p11 = scmp.eq.s32.totalorder %s136_s29, 0 }
  0x14   : > { %212 = sbr.rel (%p209_p10) target bundleno = 1038 (0x40e), region = 36  ;;  %s1105_s6 = sand.u32 (!%p209_p10), 1, %s841_s16  }
  0x15   : > { %s967_s5 = scalar_select %p137_p11, %s845_s17, %s139_s30  }
  0x16   : > { %p250_p12 = scmp.lt.s32.totalorder (!%p209_p10), %s853_s19, 1  ;;  %s973_s7 = sshll.u32 (!%p209_p10), %s1105_s6, 2 }
  0x17   : > { %1120 = sst [smem:[#allocation14_spill]] %s967_s5  ;;  %s633_s8 = sshll.u32 (!%p209_p10), %s849_s18, 3 }
  0x18   : > { %p257_p13 = scmp.lt.s32.totalorder (!%p209_p10), %s633_s8, 31  ;;  %p266_p0 = scmp.lt.s32.totalorder (!%p209_p10), %s849_s18, 3 }
  0x19   : > { %s249_s15 = scalar_lea.vmem (!%p209_p10), [#allocation4], %s973_s7  ;;  %p638_p1 = scmp.ne.s32.totalorder (!%p209_p10), %s849_s18, 0 }
  0x1b   : > { %s251_s9 = scalar_select %p250_p12, %s853_s19, 1 }
  0x1c   : > { %s1139_s8 = smov (!%p257_p13, %s633_s8), 31  ;;  %vm278_vm0 = vcmask (!%p638_p1), 162816   ;;  %vm297_vm1 = vcmask (!%p638_p1), 257024   ;;  %v871_v7 = vmov (!%p638_p1), 0.0   ;;  %v290_v9 = vlaneseq (!%p638_p1) }
  0x1d   : > { %s632_s10 = sshll.u32 %s251_s9, 3  ;;  %s634_s11 = sshll.u32 %s251_s9, 5  ;;  %298 = vst.msk [vmem:[#allocation3] sm:$0xf] (!%p638_p1), %vm297_vm1, %v871_v7  ;;  %vm295_vm3 = vcmask (!%p638_p1), 158720  }
  0x1e   : > { %s253_s14 = scalar_lea.vmem %s1099_s0, %s632_s10  ;;  %s260_s23 = sadd.s32 %s634_s11, %s1139_s8  ;;  %v291_v10 = vand.u32 (!%p638_p1), 127, %v290_v9 }
  0x1f   : > { %s635_s24 = sshll.u32 %s260_s23, 2  ;;  %s636_s6 = sshll.u32 %s251_s9, 2  ;;  %v277_v0 = vld [vmem:[%s253_s14] sm:$0xff] (!%p638_p1) }
  0x20   : > { %s984_s26 = scalar_lea.vmem %s1100_s1, %s635_s24  ;;  %276 = sbr.rel (%p638_p1) target bundleno = 351 (0x15f), region = 40  ;;  %v279_v1 = vsel (!%p638_p1), %vm278_vm0, %v277_v0, -inf  ;;  %vm292_vm2 = vcmp.eq.s32.totalorder (!%p638_p1), %v291_v10, 19 }
  0x21   : > { %s267_s25 = scalar_select %p266_p0, %s849_s18, 3 }
  0x22   : > { %280 = vmax.xlane.f32.xlu0 (!%p638_p1), %v279_v1 }
  0x23   : > { %s269_s21 = sadd.s32 %s636_s6, %s267_s25 }
  0x24   : > { %s637_s20 = sshll.u32 %s269_s21, 3 }
  0x25   : > { %s990_s28 = scalar_lea.vmem %s1102_s3, %s637_s20 }
  0xaf   : > { %v281_v2 = vpop.xlane.xlu0 %280 }
  0xb0   : > { %v282_v3 = vsub.f32 %v277_v0, %v281_v2 }
  0xb2   : > { %v283_v4 = vmul.f32 1.442695, %v282_v3 }
  0xb4   : > { %753 = vpow2.f32 %v283_v4 }
  0xbe   : > { %v754_v5 = vpop.eup %753 }
  0xbf   : > { %v285_v6 = vsel %vm278_vm0, %v754_v5, 0.0 }
  0xc0   : > { %286 = vadd.xlane.f32.xlu0 %v285_v6 }
 0x14d   : > { %v287_v8 = vpop.xlane.xlu0 %286 }
 0x14e   : > { %755 = vrcp.f32 %v287_v8 }
 0x158   : > { %v756_v11 = vpop.eup %755 }
 0x159   : > { %v289_v12 = vmul.f32 %v756_v11, %v754_v5 }
 0x15b   : > { %v293_v13 = vsel %vm292_vm2, 0.0, %v289_v12 }
 0x15c   : > { %v294_v14 = vpack.c.bf16 %v293_v13, %v293_v13 }
 0x15e   : > { %296 = vst.msk [vmem:[#allocation2] sm:$0xf] %vm295_vm3, %v294_v14 }
 0x15f PF: > { %v999_v16 = vld [vmem:[%s1101_s2] sm:$0xf]  ;;  %v1004_v17 = vld [vmem:[%s1101_s2 + $0x4] sm:$0xf]  ;;  %s1006_s5 = smov 0  }
 0x165   : > { %v994_v15 = vld [vmem:[#allocation2] sm:$0xf] }
 0x166 LB: >> { %v640_v18 = vcombine.low %v999_v16, %v1004_v17  ;;  %368 = vxpose.xlu0.c.b16.start.end [1/1] (short) (narrow) %v994_v15, 32  ;;  %v872_v19 = vmov 0.0   ;;  %vm873_vm4 = vmmov 0   ;;  %s639_s6 = sshll.u32 %s869_s5, 2  ;;  %vm317_vm5 = vcmask 130048   ;;  %s460_s8 = scalar_lea.vmem %s990_s28, %s869_s5  ;;  %s869_s5 = sphi %s1006_s5, %s307_s5  }
 0x167   : >> { %657 = vmatprep.subr.bf16.mxu0 %v872_v19  ;;  %659 = vmatprep.mubr.msk.bf16.mxu0 %vm873_vm4, %v872_v19  ;;  %s309_s9 = scalar_lea.vmem %s984_s26, %s639_s6  ;;  %v1018_v20 = vld [vmem:[%s460_s8] sm:$0x1]  ;;  %v475_v21 = vld [vmem:[#allocation3 + $0x1] sm:$0x1]  ;;  %v483_v22 = vld [vmem:[#allocation3 + $0x3] sm:$0x1] }
 0x168   : >> { %658 = vmatpush3.bf16.msra.mxu0 %v640_v18  ;;  %v310_v23 = vld [vmem:[%s309_s9] sm:$0xf]  ;;  %vm462_vm6 = vcmp.eq.f32.partialorder %v1018_v20, 0.0  ;;  %vm463_vm7 = vcmp.gt.f32.partialorder %v1018_v20, 0.0  ;;  %vm473_vm8 = vcmask 253952   ;;  %vm384_vm9 = vcmask 64512  }
 0x169   : >> { %v645_v24 = vsel %vm462_vm6, 1.0, %v872_v19  ;;  %v646_v25 = vsel %vm463_vm7, 1.0, %v872_v19  ;;  %vm391_vm10 = vcmask 1043456   ;;  %vm446_vm11 = vcmask 261120   ;;  %v471_v63 = vld [vmem:[#allocation3] sm:$0x1] }
 0x16a   : >> { %v478_v26 = vadd.f32 %v645_v24, %v475_v21  ;;  %v486_v27 = vadd.f32 %v646_v25, %v483_v22  ;;  %vm450_vm12 = vcmask 257024   ;;  %v480_v2 = vld [vmem:[#allocation3 + $0x2] sm:$0x1]  ;;  %s307_s5 = sadd.s32 1, %s869_s5  }
 0x16b   : >> { %660 = vmatmul.mubr.msk.bf16.vlgmr.msra.gmra.mrb[0].mxu0 %vm317_vm5, %v310_v23  ;;  %p304_p2 = scmp.ge.s32.totalorder %s307_s5, 8  }
 0x16c   : >> { %479 = vst.msk [vmem:[#allocation3 + $0x1] sm:$0x1] %vm473_vm8, %v478_v26  ;;  %487 = vst.msk [vmem:[#allocation3 + $0x3] sm:$0x1] %vm473_vm8, %v486_v27  ;;  %p647_p4 = scmp.ne.s32.totalorder (%p304_p2), %s849_s18, 3 }
 0x1cc   : >> { %v376_v28 = vpop.trf.xlu0 }
 0x1cd   : >> { %665 = vmatprep.mubr.msk.bf16.mxu1 %vm384_vm9, %v376_v28 }
 0x1d0   : >> { %v377_v39 = vpop.trf.xlu0 }
 0x23e   : >> { %v355_v29 = vpop.f32.mrb[0].mxu0 }
 0x23f   : >> { %v642_v30 = vmul.f32 -1.442695, %v355_v29  ;;  %v661_v31 = vpop.f32.mrb[1].mxu0 }
 0x240   : >> { %v358_v32 = vpop.f32.mrb[2].mxu0 }
 0x241   : >> { %757 = vpow2.f32 %v642_v30  ;;  %v662_v33 = vpop.f32.mrb[3].mxu0 }
 0x24b   : >> { %v758_v34 = vpop.eup %757 }
 0x24c   : >> { %v364_v35 = vadd.f32 1.0, %v758_v34 }
 0x24e   : >> { %759 = vrcp.f32 %v364_v35 }
 0x258   : >> { %v760_v36 = vpop.eup %759 }
 0x259   : >> { %v367_v37 = vpack.c.bf16 %v760_v36, %v760_v36 }
 0x25b   : >> { %669 = vmatprep.subr.msk.bf16.mxu1 %vm391_vm10, %v367_v37  ;;  %v393_v38 = vsel %vm391_vm10, %v367_v37, 0 }
 0x25c   : >> { %664 = vmatpush3.bf16.msra.mxu1 %v393_v38 }
 0x25f   : >> { %666 = vmatmul.mubr.msk.bf16.vlgmr.msra.gmra.mrb[0].mxu1 %vm384_vm9, %v377_v39 }
 0x332   : >> { %v667_v40 = vpop.f32.mrb[0].mxu1 }
 0x333   : >> { %v429_v41 = vpop.f32.mrb[1].mxu1 }
 0x334   : >> { %761 = vtanh.f32 %v429_v41  ;;  %v668_v42 = vpop.f32.mrb[2].mxu1 }
 0x335   : >> { %763 = vtanh.f32 %v667_v40  ;;  %v432_v43 = vpop.f32.mrb[3].mxu1 }
 0x336   : >> { %765 = vtanh.f32 %v432_v43 }
 0x33e   : >> { %v762_v44 = vpop.eup %761 }
 0x33f   : >> { %v764_v45 = vpop.eup %763  ;;  %v447_v47 = vsel %vm446_vm11, %v762_v44, 0.0 }
 0x340   : >> { %v766_v46 = vpop.eup %765  ;;  %v451_v50 = vsel %vm450_vm12, %v764_v45, 0.0 }
 0x341   : >> { %v448_v48 = vsel %vm446_vm11, %v766_v46, 0.0 }
 0x342   : >> { %v449_v49 = vadd.f32 %v448_v48, %v447_v47 }
 0x344   : >> { %v452_v51 = vadd.f32 %v451_v50, %v449_v49 }
 0x346   : >> { %v453_v52 = vrot.slane %v452_v51, 4 }
 0x348   : >> { %v454_v53 = vadd.f32 %v453_v52, %v452_v51 }
 0x34a   : >> { %v455_v54 = vrot.slane %v454_v53, 2 }
 0x34c   : >> { %v456_v55 = vadd.f32 %v455_v54, %v454_v53 }
 0x34e   : >> { %v457_v56 = vrot.slane %v456_v55, 1 }
 0x350   : >> { %v458_v57 = vadd.f32 %v457_v56, %v456_v55 }
 0x352   : >> { %v459_v58 = vsub.f32 0.0, %v458_v57 }
 0x354   : >> { %v464_v59 = vmax.f32 %v459_v58, 0.0  ;;  %v467_v60 = vsub.f32 5.0, %v459_v58 }
 0x356   : >> { %v465_v61 = vmul.f32 %v464_v59, %v464_v59  ;;  %v468_v62 = vmax.f32 %v467_v60, 0.0 }
 0x357   : > { %306 = sbr.rel (!%p304_p2) target bundleno = 358 (0x166), region = 94 }
 0x358   : >> { %v466_v0 = vsel %vm462_vm6, %v465_v61, 0.0  ;;  %v469_v1 = vmul.f32 %v468_v62, %v468_v62 }
 0x359   : >> { %v472_v3 = vadd.f32 %v471_v63, %v466_v0 }
 0x35a   : >> { %v470_v4 = vsel %vm463_vm7, %v469_v1, 0.0 }
 0x35b   : >> { %474 = vst.msk [vmem:[#allocation3] sm:$0x1] %vm473_vm8, %v472_v3  ;;  %v481_v5 = vadd.f32 %v480_v2, %v470_v4 }
 0x35d   : >> { %482 = vst.msk [vmem:[#allocation3 + $0x2] sm:$0x1] %vm473_vm8, %v481_v5 }
 0x35e   : > { %491 = sbr.rel (%p647_p4) target bundleno = 1013 (0x3f5), region = 51 }
 0x364   : > { %v492_v6 = vld [vmem:[#allocation3] sm:$0xf] (!%p647_p4) }
 0x365   : > { %v494_v7 = vsel %vm450_vm12, %v492_v6, 0.0 }
 0x366   : > { %495 = vadd.xlane.f32.xlu0 %v494_v7 }
 0x3f3   : > { %v496_v8 = vpop.xlane.xlu0 %495 }
 0x3f4   : > { %497 = vst [vmem:[%s249_s15] sm:$0xf] %v496_v8 }
 0x3f5 PF: > { %s649_s10 = sshll.u32 %s853_s19, 6  ;;  %s512_s18 = sshll.u32 %s249_s15, 4  ;;  %s513_s18 = int_to_ptr.vmem [resolvable:$true] %s512_s18 }
 0x3f6   : > { %s1048_s26 = scalar_lea.hbm %s1103_s4, %s649_s10  ;;  %s1121_s28 = sand.u32 1, %s841_s16  }
 0x3f7   : > { %s499_s13 = scalar_lea.sflag [#allocation5], %s1121_s28  ;;  %s767_s14 = scalar_lea.vmem %s513_s18, 64 }
 0x3f8   : > { %p768_p5 = scmp.ne.s32.totalorder %s513_s18, %s767_s14  ;;  %s874_s23 = smov [#allocation4]  }
 0x3f9   : > { %s771_s24 = sshll.u32 %s874_s23, 4  ;;  %s772_s24 = int_to_ptr.vmem [resolvable:$false] %s771_s24 }
 0x3fa   : > { %p769_p6 = pnand %p768_p5, %p949_p3  ;;  %s773_s29 = scalar_lea.vmem %s772_s24, 128 }
 0x3fb   : > { %p774_p8 = scmp.lt.s32.totalorder %s513_s18, %s772_s24  ;;  %p775_p10 = scmp.lt.s32.totalorder %s773_s29, %s767_s14 }
 0x3fc   : > { %p770_p7 = pneg %p769_p6 }
 0x3fd   : > { %p776_p11 = por %p775_p10, %p774_p8 }
 0x3ff   : > { %p777_p12 = pnand %p776_p11, %p770_p7 }
 0x401   : > { %780 = shalt.err (!%p777_p12)
}
 0x402   : > { %s781_s15 = scalar_lea.hbm %s1048_s26, 64  ;;  %s785_s30 = scalar_lea.hbm %s1103_s4, 128 }
 0x403   : > { %p782_p13 = scmp.ne.s32.totalorder %s1048_s26, %s781_s15  ;;  %p786_p2 = scmp.lt.u32.totalorder %s1048_s26, %s1103_s4 }
 0x404   : > { %p787_p4 = scmp.lt.u32.totalorder %s785_s30, %s781_s15  ;;  %p789_p6 = scmp.lt.u32.totalorder %s781_s15, %s1048_s26 }
 0x405   : > { %p783_p0 = pnand %p782_p13, %p949_p3 }
 0x406   : > { %p788_p5 = por %p787_p4, %p786_p2 }
 0x407   : > { %p784_p1 = pneg %p783_p0 }
 0x408   : > { %p790_p7 = por %p789_p6, %p788_p5 }
 0x40a   : > { %p791_p8 = pnand %p790_p7, %p784_p1 }
 0x40c   : > { %794 = shalt.err (!%p791_p8)
}
 0x40d   : > { %670 = dma.vmem_to_hbm [thread:$0]  (%p949_p3), %s513_s18, 64, %s1048_s26, %s499_s13  }
 0x40e PF: > { %s1122_s21 = sld [smem:[#allocation7_spill]]  ;;  %p676_p10 = scmp.ge.s32.totalorder %s865_s22, 2 }
 0x410   : > { %p673_p11 = pnand %p676_p10, %p959_p9 }
 0x414   : > { %s524_s5 = sand.u32 1, %s1122_s21  }
 0x415   : > { %s525_s6 = scalar_lea.sflag [#allocation5], %s524_s5 }
 0x416   : > { %832 = dma.done.wait (!%p673_p11), %s525_s6, 64  }
 0x417   : > { %834 = vsyncadd (!%p673_p11), %s525_s6, 4294967232  ;;  %s17_s22 = sadd.s32 1, %s865_s22   ;;  %s1124_s8 = sld [smem:[#allocation8_spill]] }
 0x418   : > { %p14_p12 = scmp.ge.s32.totalorder %s17_s22, 10   ;;  %s1125_s17 = sld [smem:[#allocation14_spill]] }
 0x419   : > { %s1126_s18 = sld [smem:[#allocation9_spill]]  ;;  %s1127_s19 = sld [smem:[#allocation10_spill]] }
 0x41a   : > { %s1128_s20 = sld [smem:[#allocation11_spill]]  ;;  %s1129_s21 = sld [smem:[#allocation12_spill]] }
 0x41b   : > { %s1130_s15 = smov %s841_s16  ;;  %16 = sbr.rel (!%p14_p12) target bundleno = 5 (0x5), region = 105 }
 0x41d   : > { %s1131_s16 = smov %s1124_s8 }
 0x422   :  { %530 = vsyncpa [#allocation5], 1 }
 0x423   :  { %532 = vsyncpa [#allocation5 + $0x1], 1 }

</bundles_post_ra>
